<compile_context>
chip_gen: v5e
topology: v5e:2x2
jax: 0.10.0
libtpu: 0.0.40
codegen_flags: <defaults>
</compile_context>

<pallas_src>
import functools
import math

import jax
import jax.numpy as jnp
from jax.experimental import pallas as pl
from jax.experimental.pallas import tpu as pltpu


def _round_up(x, m):
    return ((x + m - 1) // m) * m


# ----------------------------- Pallas kernels ------------------------------ #

def _head_kernel(p_ref, wbT_ref, wsT_ref, bsT_ref, o_ref):
    # "base" stand-in (stride-8 patch-embed + ReLU) followed by the seg 1x1 conv.
    # Transposed orientation: channels on sublanes, pixels on lanes, so the compact
    # class-major low-res logits come straight off the MXU with no in-kernel
    # relayout.  bf16 operands, f32 accumulation, bf16 store (small intermediate).
    featT = jnp.dot(wbT_ref[...], p_ref[...],
                    preferred_element_type=jnp.float32)            # (Dp, CB)
    featT = jnp.maximum(featT, 0.0).astype(jnp.bfloat16)
    logitsT = jnp.dot(wsT_ref[...], featT,
                      preferred_element_type=jnp.float32)          # (Cp8, CB)
    logitsT = logitsT + bsT_ref[...]                               # bias (Cp8, 1)
    o_ref[...] = logitsT.astype(jnp.bfloat16)


def _up_kernel(x_ref, uh_ref, uwt_ref, o_ref):
    # Exact depthwise bilinear ConvTranspose2d(16, stride=8, pad=4), one
    # (batch, class) plane per grid step:  out = Uh @ X @ Uw^T.
    # bf16 operands, f32 accumulation; output plane is lane-dense (full W), NCHW.
    y = jnp.dot(x_ref[...], uwt_ref[...],
                preferred_element_type=jnp.float32)                # (Ho, Wout)
    o_ref[...] = jnp.dot(uh_ref[...], y.astype(jnp.bfloat16),
                         preferred_element_type=jnp.float32)       # (Hout, Wout)


# ------------------------------ host wrapper ------------------------------- #

def make_bilinear_matrix(n_in, stride=8, ksize=16, pad=4):
    """1D interpolation matrix of the fill_up_weights ConvTranspose kernel."""
    f = math.ceil(ksize / 2)
    c = (2 * f - 1 - f % 2) / (2.0 * f)
    n_out = (n_in - 1) * stride - 2 * pad + ksize   # == stride * n_in
    p = jnp.arange(n_out)[:, None]
    q = jnp.arange(n_in)[None, :]
    k = p + pad - stride * q
    g = 1.0 - jnp.abs(k.astype(jnp.float32) / f - c)
    mask = (k >= 0) & (k < ksize)
    return jnp.where(mask, g, 0.0).astype(jnp.float32)


def init_params(key, cin, out_dim, classes, ho, wo, stride=8):
    """bf16 weights in the (transposed, zero-padded) layouts the kernels consume."""
    K = cin * stride * stride
    Kp = _round_up(K, 128)
    Dp = _round_up(out_dim, 128)
    Cp8 = _round_up(classes, 8)
    k1, k2 = jax.random.split(key)
    # stand-in base weight (patch embed): He-style init; padding rows/cols zeroed.
    wbT = jax.random.normal(k1, (Dp, Kp), jnp.float32) * math.sqrt(2.0 / K)
    wbT = jnp.where((jnp.arange(Dp)[:, None] < out_dim)
                    & (jnp.arange(Kp)[None, :] < K), wbT, 0.0)
    # seg Conv2d(out_dim, classes, 1): torch init normal(0, sqrt(2/(kh*kw*classes)))
    wsT = jax.random.normal(k2, (Cp8, Dp), jnp.float32) * math.sqrt(2.0 / classes)
    wsT = jnp.where((jnp.arange(Cp8)[:, None] < classes)
                    & (jnp.arange(Dp)[None, :] < out_dim), wsT, 0.0)
    bsT = jnp.zeros((Cp8, 1), jnp.float32)           # torch zeroes the seg bias
    return {
        "wbT": wbT.astype(jnp.bfloat16),             # (Dp, Kp)
        "wsT": wsT.astype(jnp.bfloat16),             # (Cp8, Dp)
        "bsT": bsT,                                  # (Cp8, 1) f32
        "uh": make_bilinear_matrix(ho).astype(jnp.bfloat16),     # (8*ho, ho)
        "uwt": make_bilinear_matrix(wo).T.astype(jnp.bfloat16),  # (wo, 8*wo)
    }


def drn_seg_forward(x, params, classes):
    N, Cin, H, W = x.shape
    S = 8                                    # DRN output stride == upsampling factor
    Ho, Wo = H // S, W // S
    Hout, Wout = H, W
    wbT, wsT, bsT = params["wbT"], params["wsT"], params["bsT"]
    uh, uwt = params["uh"], params["uwt"]
    Dp, Kp = wbT.shape
    Cp8 = wsT.shape[0]
    K = Cin * S * S
    PIX = Ho * Wo

    # ---- glue: NCHW -> K-major patches (N, Kp, Ho*Wo).  Cast to bf16 *before*
    # the patchify transpose so the XLA transpose moves half the bytes. ----
    p = x.astype(jnp.bfloat16).reshape(N, Cin, Ho, S, Wo, S)
    p = p.transpose(0, 1, 3, 5, 2, 4).reshape(N, K, PIX)
    pT = jnp.pad(p, ((0, 0), (0, Kp - K), (0, 0)))

    # pixel-band tiling of the head: bounded per-step VMEM at large images and
    # >= 2 parallel grid steps for v7x megacore.  Band width must be a multiple
    # of 128 lanes or the full pixel axis.
    if PIX > 512 and PIX % 512 == 0:
        CB = 512
    else:
        CB = PIX
    NB = PIX // CB

    head_cost = pl.CostEstimate(
        flops=int(2 * N * PIX * (Dp * Kp + Cp8 * Dp)),
        transcendentals=0,
        bytes_accessed=int(pT.size * 2 + wbT.size * 2 + wsT.size * 2
                           + bsT.size * 4 + N * Cp8 * PIX * 2),
    )
    # ---- head kernel: base stand-in + seg 1x1 conv (compact bf16 logits out) ----
    low = pl.pallas_call(
        _head_kernel,
        out_shape=jax.ShapeDtypeStruct((N, Cp8, PIX), jnp.bfloat16),
        grid=(N, NB),
        in_specs=[
            pl.BlockSpec((None, Kp, CB), lambda n, b: (n, 0, b)),
            pl.BlockSpec((Dp, Kp), lambda n, b: (0, 0)),
            pl.BlockSpec((Cp8, Dp), lambda n, b: (0, 0)),
            pl.BlockSpec((Cp8, 1), lambda n, b: (0, 0)),
        ],
        out_specs=pl.BlockSpec((None, Cp8, CB), lambda n, b: (n, 0, b)),
        compiler_params=pltpu.CompilerParams(
            dimension_semantics=("parallel", "parallel"),
            vmem_limit_bytes=64 * 1024 * 1024),
        cost_estimate=head_cost,
    )(pT, wbT, wsT, bsT)

    # ---- glue (tiny, bf16): (N, Cp8, Ho*Wo) -> (N, classes, Ho, Wo) ----
    low = low[:, :classes, :].reshape(N, classes, Ho, Wo)

    # ---- upsample kernel: separable bilinear ConvTranspose2d, one (batch, class)
    # plane per grid step; lane-dense f32 NCHW output, bounded VMEM on v7x. ----
    up_cost = pl.CostEstimate(
        flops=int(2 * N * classes * (Ho * Wo * Wout + Ho * Wout * Hout)),
        transcendentals=0,
        bytes_accessed=int(low.size * 2 + uh.size * 2 + uwt.size * 2
                           + N * classes * Hout * Wout * 4),
    )
    out = pl.pallas_call(
        _up_kernel,
        out_shape=jax.ShapeDtypeStruct((N, classes, Hout, Wout), jnp.float32),
        grid=(N, classes),
        in_specs=[
            pl.BlockSpec((None, None, Ho, Wo), lambda n, c: (n, c, 0, 0)),
            pl.BlockSpec((Hout, Ho), lambda n, c: (0, 0)),
            pl.BlockSpec((Wo, Wout), lambda n, c: (0, 0)),
        ],
        out_specs=pl.BlockSpec((None, None, Hout, Wout),
                               lambda n, c: (n, c, 0, 0)),
        compiler_params=pltpu.CompilerParams(
            dimension_semantics=("parallel", "parallel"),
            vmem_limit_bytes=32 * 1024 * 1024),
        cost_estimate=up_cost,
    )(low, uh, uwt)
    return out


# ---------------------------------- main ----------------------------------- #

if __name__ == "__main__":
    N, Cin, H, W = 2, 4, 32, 32      # small shapes; H, W multiples of 8
    out_dim, classes = 32, 8
    S = 8
    Ho, Wo = H // S, W // S

    key = jax.random.PRNGKey(0)
    kx, kp = jax.random.split(key)
    x = jax.random.normal(kx, (N, Cin, H, W), jnp.float32)
    params = init_params(kp, Cin, out_dim, classes, Ho, Wo)

    fwd = jax.jit(functools.partial(drn_seg_forward, classes=classes))
    out = jax.block_until_ready(fwd(x, params))
    assert out.shape == (N, classes, H, W), out.shape
    assert out.dtype == jnp.float32

    # pure-JAX reference applying the same bf16 roundings as the kernels
    K = Cin * S * S
    pr = x.astype(jnp.bfloat16).astype(jnp.float32)
    pr = pr.reshape(N, Cin, Ho, S, Wo, S).transpose(0, 1, 3, 5, 2, 4)
    pr = pr.reshape(N, K, Ho * Wo)
    wbT = params["wbT"].astype(jnp.float32)[:, :K]
    wsT = params["wsT"].astype(jnp.float32)
    bsT = params["bsT"]
    featT = jnp.maximum(jnp.einsum("dk,nkp->ndp", wbT, pr,
                                   preferred_element_type=jnp.float32), 0.0)
    featT = featT.astype(jnp.bfloat16).astype(jnp.float32)
    logitsT = jnp.einsum("cd,ndp->ncp", wsT, featT,
                         preferred_element_type=jnp.float32) + bsT[None]
    low_ref = logitsT[:, :classes, :].astype(jnp.bfloat16).astype(jnp.float32)
    low_ref = low_ref.reshape(N, classes, Ho, Wo)
    uh_f = params["uh"].astype(jnp.float32)
    uwt_f = params["uwt"].astype(jnp.float32)
    y_ref = jnp.einsum("nchw,wW->nchW", low_ref, uwt_f,
                       preferred_element_type=jnp.float32)
    y_ref = y_ref.astype(jnp.bfloat16).astype(jnp.float32)
    ref = jnp.einsum("Hh,nchW->ncHW", uh_f, y_ref,
                     preferred_element_type=jnp.float32)
    err = float(jnp.max(jnp.abs(out - ref)))
    assert jnp.allclose(out, ref, rtol=2e-2, atol=2e-2), err

    print("KERNEL_OK")
</pallas_src>

<mosaic_0001>
module attributes {stable_mosaic.version = 11 : i64} {
  func.func @_head_kernel(%arg0: i32, %arg1: i32, %arg2: memref<1x256x16xbf16, #tpu.memory_space<vmem>>, %arg3: memref<128x256xbf16, #tpu.memory_space<vmem>>, %arg4: memref<8x128xbf16, #tpu.memory_space<vmem>>, %arg5: memref<8x1xf32, #tpu.memory_space<vmem>>, %arg6: memref<1x8x16xbf16, #tpu.memory_space<vmem>>) attributes {dimension_semantics = [#tpu.dimension_semantics<parallel>, #tpu.dimension_semantics<parallel>], iteration_bounds = array<i64: 2, 1>, scalar_prefetch = 0 : i64, scratch_operands = 0 : i64, tpu.core_type = #tpu.core_type<tc>, window_params = [{transform_indices = @transform_0, window_bounds = array<i64: 1, 256, 16>}, {pipeline_mode = #tpu.pipeline_mode<synchronous>, transform_indices = @transform_1, window_bounds = array<i64: 128, 256>}, {pipeline_mode = #tpu.pipeline_mode<synchronous>, transform_indices = @transform_2, window_bounds = array<i64: 8, 128>}, {pipeline_mode = #tpu.pipeline_mode<synchronous>, transform_indices = @transform_3, window_bounds = array<i64: 8, 1>}, {transform_indices = @transform_4, window_bounds = array<i64: 1, 8, 16>}]} {
    %c0 = arith.constant 0 : index
    %c0_0 = arith.constant 0 : index
    %0 = vector.load %arg3[%c0, %c0_0] : memref<128x256xbf16, #tpu.memory_space<vmem>>, vector<128x256xbf16>
    %c0_1 = arith.constant 0 : index
    %c0_2 = arith.constant 0 : index
    %c0_3 = arith.constant 0 : index
    %1 = vector.load %arg2[%c0_1, %c0_2, %c0_3] : memref<1x256x16xbf16, #tpu.memory_space<vmem>>, vector<1x256x16xbf16>
    %2 = vector.shape_cast %1 : vector<1x256x16xbf16> to vector<256x16xbf16>
    %cst = arith.constant dense<0.000000e+00> : vector<128x16xf32>
    %3 = tpu.matmul %0, %2, %cst {dimension_numbers = #tpu.dot_dimension_numbers<[1], [0], [0], [1], [0, 0, 1, 1], [], []>} : vector<128x256xbf16>, vector<256x16xbf16>, vector<128x16xf32> -> vector<128x16xf32>
    %cst_4 = arith.constant 0.000000e+00 : f32
    %4 = vector.broadcast %cst_4 : f32 to vector<128x16xf32>
    %5 = arith.maximumf %3, %4 : vector<128x16xf32>
    %6 = arith.truncf %5 : vector<128x16xf32> to vector<128x16xbf16>
    %c0_5 = arith.constant 0 : index
    %c0_6 = arith.constant 0 : index
    %7 = vector.load %arg4[%c0_5, %c0_6] : memref<8x128xbf16, #tpu.memory_space<vmem>>, vector<8x128xbf16>
    %cst_7 = arith.constant dense<0.000000e+00> : vector<8x16xf32>
    %8 = tpu.matmul %7, %6, %cst_7 {dimension_numbers = #tpu.dot_dimension_numbers<[1], [0], [0], [1], [0, 0, 1, 1], [], []>} : vector<8x128xbf16>, vector<128x16xbf16>, vector<8x16xf32> -> vector<8x16xf32>
    %c0_8 = arith.constant 0 : index
    %c0_9 = arith.constant 0 : index
    %9 = vector.load %arg5[%c0_8, %c0_9] : memref<8x1xf32, #tpu.memory_space<vmem>>, vector<8x1xf32>
    %10 = vector.broadcast %9 : vector<8x1xf32> to vector<8x16xf32>
    %11 = arith.addf %8, %10 : vector<8x16xf32>
    %12 = arith.truncf %11 : vector<8x16xf32> to vector<8x16xbf16>
    %c0_10 = arith.constant 0 : index
    %c0_11 = arith.constant 0 : index
    %c0_12 = arith.constant 0 : index
    %13 = vector.load %arg6[%c0_10, %c0_11, %c0_12] : memref<1x8x16xbf16, #tpu.memory_space<vmem>>, vector<1x8x16xbf16>
    %14 = vector.shape_cast %13 : vector<1x8x16xbf16> to vector<8x16xbf16>
    %15 = vector.shape_cast %12 : vector<8x16xbf16> to vector<1x8x16xbf16>
    tpu.vector_store %arg6[%c0_10, %c0_11, %c0_12], %15 {strides = array<i32>} : memref<1x8x16xbf16, #tpu.memory_space<vmem>>, vector<1x8x16xbf16>,
    return
  }
  func.func @transform_0(%arg0: i32, %arg1: i32) -> (i32, i32, i32) {
    %c0_i32 = arith.constant 0 : i32
    %c0_i32_0 = arith.constant 0 : i32
    return %arg0, %c0_i32, %arg1 : i32, i32, i32
  }
  func.func @transform_1(%arg0: i32, %arg1: i32) -> (i32, i32) {
    %c0_i32 = arith.constant 0 : i32
    %c0_i32_0 = arith.constant 0 : i32
    %c0_i32_1 = arith.constant 0 : i32
    return %c0_i32, %c0_i32_0 : i32, i32
  }
  func.func @transform_2(%arg0: i32, %arg1: i32) -> (i32, i32) {
    %c0_i32 = arith.constant 0 : i32
    %c0_i32_0 = arith.constant 0 : i32
    %c0_i32_1 = arith.constant 0 : i32
    return %c0_i32, %c0_i32_0 : i32, i32
  }
  func.func @transform_3(%arg0: i32, %arg1: i32) -> (i32, i32) {
    %c0_i32 = arith.constant 0 : i32
    %c0_i32_0 = arith.constant 0 : i32
    %c0_i32_1 = arith.constant 0 : i32
    return %c0_i32, %c0_i32_0 : i32, i32
  }
  func.func @transform_4(%arg0: i32, %arg1: i32) -> (i32, i32, i32) {
    %c0_i32 = arith.constant 0 : i32
    %c0_i32_0 = arith.constant 0 : i32
    return %arg0, %c0_i32, %arg1 : i32, i32, i32
  }
}

module attributes {stable_mosaic.version = 11 : i64} {
  func.func @_up_kernel(%arg0: i32, %arg1: i32, %arg2: memref<1x1x4x4xbf16, #tpu.memory_space<vmem>>, %arg3: memref<32x4xbf16, #tpu.memory_space<vmem>>, %arg4: memref<4x32xbf16, #tpu.memory_space<vmem>>, %arg5: memref<1x1x32x32xf32, #tpu.memory_space<vmem>>) attributes {dimension_semantics = [#tpu.dimension_semantics<parallel>, #tpu.dimension_semantics<parallel>], iteration_bounds = array<i64: 2, 8>, scalar_prefetch = 0 : i64, scratch_operands = 0 : i64, tpu.core_type = #tpu.core_type<tc>, window_params = [{transform_indices = @transform_0, window_bounds = array<i64: 1, 1, 4, 4>}, {pipeline_mode = #tpu.pipeline_mode<synchronous>, transform_indices = @transform_1, window_bounds = array<i64: 32, 4>}, {pipeline_mode = #tpu.pipeline_mode<synchronous>, transform_indices = @transform_2, window_bounds = array<i64: 4, 32>}, {transform_indices = @transform_3, window_bounds = array<i64: 1, 1, 32, 32>}]} {
    %c0 = arith.constant 0 : index
    %c0_0 = arith.constant 0 : index
    %c0_1 = arith.constant 0 : index
    %c0_2 = arith.constant 0 : index
    %0 = vector.load %arg2[%c0, %c0_0, %c0_1, %c0_2] : memref<1x1x4x4xbf16, #tpu.memory_space<vmem>>, vector<1x1x4x4xbf16>
    %1 = vector.shape_cast %0 : vector<1x1x4x4xbf16> to vector<4x4xbf16>
    %c0_3 = arith.constant 0 : index
    %c0_4 = arith.constant 0 : index
    %2 = vector.load %arg4[%c0_3, %c0_4] : memref<4x32xbf16, #tpu.memory_space<vmem>>, vector<4x32xbf16>
    %cst = arith.constant dense<0.000000e+00> : vector<4x32xf32>
    %3 = tpu.matmul %1, %2, %cst {dimension_numbers = #tpu.dot_dimension_numbers<[1], [0], [0], [1], [0, 0, 1, 1], [], []>} : vector<4x4xbf16>, vector<4x32xbf16>, vector<4x32xf32> -> vector<4x32xf32>
    %c0_5 = arith.constant 0 : index
    %c0_6 = arith.constant 0 : index
    %4 = vector.load %arg3[%c0_5, %c0_6] : memref<32x4xbf16, #tpu.memory_space<vmem>>, vector<32x4xbf16>
    %5 = arith.truncf %3 : vector<4x32xf32> to vector<4x32xbf16>
    %cst_7 = arith.constant dense<0.000000e+00> : vector<32x32xf32>
    %6 = tpu.matmul %4, %5, %cst_7 {dimension_numbers = #tpu.dot_dimension_numbers<[1], [0], [0], [1], [0, 0, 1, 1], [], []>} : vector<32x4xbf16>, vector<4x32xbf16>, vector<32x32xf32> -> vector<32x32xf32>
    %c0_8 = arith.constant 0 : index
    %c0_9 = arith.constant 0 : index
    %c0_10 = arith.constant 0 : index
    %c0_11 = arith.constant 0 : index
    %7 = vector.load %arg5[%c0_8, %c0_9, %c0_10, %c0_11] : memref<1x1x32x32xf32, #tpu.memory_space<vmem>>, vector<1x1x32x32xf32>
    %8 = vector.shape_cast %7 : vector<1x1x32x32xf32> to vector<32x32xf32>
    %9 = vector.shape_cast %6 : vector<32x32xf32> to vector<1x1x32x32xf32>
    tpu.vector_store %arg5[%c0_8, %c0_9, %c0_10, %c0_11], %9 {strides = array<i32>} : memref<1x1x32x32xf32, #tpu.memory_space<vmem>>, vector<1x1x32x32xf32>,
    return
  }
  func.func @transform_0(%arg0: i32, %arg1: i32) -> (i32, i32, i32, i32) {
    %c0_i32 = arith.constant 0 : i32
    %c0_i32_0 = arith.constant 0 : i32
    %c0_i32_1 = arith.constant 0 : i32
    return %arg0, %arg1, %c0_i32, %c0_i32_0 : i32, i32, i32, i32
  }
  func.func @transform_1(%arg0: i32, %arg1: i32) -> (i32, i32) {
    %c0_i32 = arith.constant 0 : i32
    %c0_i32_0 = arith.constant 0 : i32
    %c0_i32_1 = arith.constant 0 : i32
    return %c0_i32, %c0_i32_0 : i32, i32
  }
  func.func @transform_2(%arg0: i32, %arg1: i32) -> (i32, i32) {
    %c0_i32 = arith.constant 0 : i32
    %c0_i32_0 = arith.constant 0 : i32
    %c0_i32_1 = arith.constant 0 : i32
    return %c0_i32, %c0_i32_0 : i32, i32
  }
  func.func @transform_3(%arg0: i32, %arg1: i32) -> (i32, i32, i32, i32) {
    %c0_i32 = arith.constant 0 : i32
    %c0_i32_0 = arith.constant 0 : i32
    %c0_i32_1 = arith.constant 0 : i32
    return %arg0, %arg1, %c0_i32, %c0_i32_0 : i32, i32, i32, i32
  }
}

</mosaic_0001>

<bundles_post_ra>
// kernel: drn_seg_forward.3
= control target key start
LH: loop header
LB: loop body
LE: loop exit
PB: predicated region body
PF: predicated region fallthrough
CT: control target
= control target key end

     0   :  { %8 = vsyncpa [#allocation3], 0  ;;  %s722_s0 = inlined_call_operand.vmem [shape: bf16[2,8,4,4], index: 0, kind: input, shape index: {}]   ;;  %s723_s1 = inlined_call_operand.vmem [shape: bf16[32,4], index: 1, kind: input, shape index: {}]   ;;  %s724_s2 = inlined_call_operand.vmem [shape: bf16[4,32], index: 2, kind: input, shape index: {}]   ;;  %s725_s3 = inlined_call_operand.hbm [shape: f32[2,8,32,32], index: 3, kind: output, shape index: {}]  }
   0x1   :  { %10 = vsyncpa [#allocation3 + $0x1], 0  ;;  %s585_s12 = smov 0   ;;  %s587_s13 = smov 0  }
   0x2   :  { %s589_s14 = smov 0   ;;  %s591_s15 = smov 0  }
   0x3   :  { %s593_s16 = smov 0   ;;  %s595_s17 = smov 0  }
   0x4   :  { %s597_s18 = smov 0   ;;  %s599_s19 = smov 0  }
   0x5 LB: > { %s366_s20 = sadd.s32 4294967295, %s561_s19   ;;  %s367_s21 = sadd.s32 4294967294, %s561_s19   ;;  %s561_s19 = sphi %s599_s19, %s16_s19   ;;  %s557_s18 = sphi %s597_s18, %s734_s18   ;;  %s553_s17 = sphi %s595_s17, %s733_s17   ;;  %s549_s16 = sphi %s593_s16, %s732_s16   ;;  %s545_s15 = sphi %s591_s15, %s731_s15   ;;  %s541_s14 = sphi %s589_s14, %s730_s14   ;;  %s537_s13 = sphi %s587_s13, %s729_s13   ;;  %s533_s12 = sphi %s585_s12, %s728_s12  }
   0x6   : > { %s25_s22 = sadd.s32 1, %s553_s17  ;;  %s28_s23 = sadd.s32 1, %s557_s18 }
   0x7   : > { %p26_p0 = scmp.ge.s32.totalorder %s25_s22, 8  ;;  %p117_p1 = scmp.ne.s32.totalorder %s541_s14, %s537_s13 }
   0x8   : > { %p118_p2 = scmp.eq.s32.totalorder %s366_s20, 15  ;;  %p123_p5 = scmp.ne.s32.totalorder %s537_s13, %s533_s12 }
   0x9   : > { %s736_s22 = smov (%p26_p0, %s25_s22), 0  ;;  %s738_s23 = smov (!%p26_p0, %s28_s23), %s557_s18 }
   0xa   : > { %s103_s24 = ssub.s32 %s553_s17, %s736_s22  ;;  %p636_p3 = por %p118_p2, %p117_p1 }
   0xb   : > { %p30_p4 = scmp.ge.s32.totalorder %s738_s23, 2  ;;  %p124_p6 = scmp.eq.s32.totalorder %s367_s21, 15 }
   0xc   : > { %p370_p7 = scmp.ge.s32.totalorder %s561_s19, 1  ;;  %p159_p9 = scmp.lt.s32.totalorder %s561_s19, 17 }
   0xd   : > { %s740_s23 = smov (%p30_p4, %s738_s23), 0  ;;  %p645_p8 = por %p124_p6, %p123_p5 }
   0xe   : > { %s102_s27 = ssub.s32 %s557_s18, %s740_s23  ;;  %s107_s28 = sadd.s32 1, %s541_s14 }
   0xf   : > { %s104_s29 = sor.u32 %s103_s24, %s102_s27  ;;  %p160_p10 = pnand %p370_p7, %p159_p9 }
  0x10   : > { %p105_p11 = scmp.eq.s32.totalorder %s104_s29, 0  ;;  %p186_p12 = scmp.lt.s32.totalorder (!%p160_p10), %s549_s16, 1 }
  0x11   : > { %163 = sbr.rel (%p160_p10) target bundleno = 305 (0x131), region = 32  ;;  %p188_p13 = scmp.lt.s32.totalorder (!%p160_p10), %s545_s15, 7 }
  0x12   : > { %s654_s30 = scalar_select %p105_p11, %s541_s14, %s107_s28  }
  0x13   : > { %s183_s4 = sand.u32 (!%p160_p10), 1, %s537_s13  }
  0x14   : > { %s371_s5 = sshll.u32 (!%p160_p10), %s183_s4, 5 }
  0x16   : > { %v196_v0 = vld [vmem:[%s724_s2] sm:$0x3]  ;;  %vm201_vm0 = vcmask 1041408   ;;  %s187_s6 = scalar_select %p186_p12, %s549_s16, 1  ;;  %vm197_vm1 = vcmask 31744   ;;  %v392_v7 = vld [vmem:[%s723_s1 + $0x8] sm:$0xff] }
  0x17   : > { %v203_v1 = vsel %vm201_vm0, %v196_v0, 0  ;;  %s189_s7 = scalar_select %p188_p13, %s545_s15, 7  ;;  %v391_v6 = vld [vmem:[%s723_s1] sm:$0xff]  ;;  %vm261_vm2 = vcmask 261120  }
  0x18   : > { %212 = vmatpush.bf16.msra.mxu0 %v203_v1  ;;  %s372_s8 = sshll.u32 %s187_s6, 3  ;;  %s386_s6 = sshll.u32 %s545_s15, 2 }
  0x19   : > { %s191_s9 = sadd.s32 %s372_s8, %s189_s7  ;;  %s387_s7 = sshll.u32 %s549_s16, 5 }
  0x1a   : > { %s373_s10 = sshll.u32 %s191_s9, 1  ;;  %s278_s8 = sadd.s32 %s387_s7, %s386_s6 }
  0x1b   : > { %s193_s21 = scalar_lea.vmem %s722_s0, %s373_s10  ;;  %s185_s9 = scalar_lea.vmem [#allocation2], %s371_s5 }
  0x1c   : > { %v195_v2 = vld [vmem:[%s193_s21] sm:$0x3]  ;;  %s388_s10 = sshll.u32 %s278_s8, 3  ;;  %s281_s24 = sshll.u32 %s185_s9, 4  ;;  %s282_s24 = int_to_ptr.vmem [resolvable:$true] %s281_s24 }
  0x1d   : > { %374 = vmatmul.msk.bf16.vlgmr.msra.gmra.mxu0 %vm197_vm1, %v195_v2  ;;  %s280_s21 = scalar_lea.hbm %s725_s3, %s388_s10  ;;  %s267_s16 = scalar_lea.sflag [#allocation3], %s183_s4 }
  0x1e   : > { %s283_s15 = sshll.u32 %s280_s21, 4  ;;  %s487_s6 = scalar_lea.hbm %s725_s3, 512  ;;  %s284_s15 = int_to_ptr.hbm [resolvable:$true] %s283_s15 }
  0x1f   : > { %s481_s27 = sshra.s32 %s284_s15, 4  ;;  %s482_s27 = int_to_ptr.hbm [resolvable:$true] %s481_s27 }
  0x20   : > { %s483_s28 = scalar_lea.hbm %s482_s27, 32  ;;  %p488_p4 = scmp.lt.s32.totalorder %s482_s27, %s725_s3 }
  0x21   : > { %p484_p0 = scmp.ne.s32.totalorder %s482_s27, %s483_s28  ;;  %p489_p5 = scmp.lt.s32.totalorder %s487_s6, %s483_s28 }
  0x23   : > { %p485_p1 = pnand %p484_p0, %p636_p3  ;;  %p490_p6 = por %p489_p5, %p488_p4 }
  0x25   : > { %p486_p2 = pneg %p485_p1 }
  0x27   : > { %p491_p7 = pnand %p490_p6, %p486_p2 }
  0x9a   : > { %v214_v3 = vpop.f32.mrf.mxu0 }
  0x9b   : > { %v222_v4 = vpack.c.bf16 %v214_v3, %v214_v3 }
  0x9d   : > { %v240_v5 = vsel %vm201_vm0, %v222_v4, 0 }
  0x9e   : > { %249 = vmatpush.bf16.msra.mxu1 %v240_v5  ;;  %393 = vmatpush.bf16.msra.mxu2 %v240_v5 }
  0xa1   : > { %383 = vmatmul.msk.bf16.vlgmr.msra.gmra.mxu1 %vm197_vm1, %v391_v6  ;;  %384 = vmatmul.msk.bf16.vlgmr.msra.gmra.mxu2 %vm197_vm1, %v392_v7 }
  0xa2   : > { %v216_v8 = vpop.f32.mrf.mxu0 }
 0x11e   : > { %v251_v9 = vpop.f32.mrf.mxu1 }
 0x11f   : > { %262 = vst.msk [vmem:[%s185_s9] sm:$0xff] %vm261_vm2, %v251_v9 }
 0x124   : > { %v256_v10 = vpop.f32.mrf.mxu2 }
 0x125   : > { %264 = vst.msk [vmem:[%s185_s9 + $0x10] sm:$0xff] %vm261_vm2, %v256_v10 }
 0x126   : > { %v253_v11 = vpop.f32.mrf.mxu1 }
 0x127   : > { %263 = vst.msk [vmem:[%s185_s9 + $0x8] sm:$0xff] %vm261_vm2, %v253_v11 }
 0x12c   : > { %v258_v12 = vpop.f32.mrf.mxu2 }
 0x12d   : > { %265 = vst.msk [vmem:[%s185_s9 + $0x18] sm:$0xff] %vm261_vm2, %v258_v12 }
 0x12e   : > { %494 = shalt.err (!%p491_p7)
}
 0x12f   : > { %s563_s4 = smov 128   ;;  %s564_s9 = smov 8  }
 0x130   : > { %394 = dma.vmem_to_hbm [thread:$0]  (%p636_p3), %s282_s24, 512, %s284_s15, %s267_s16, %s563_s4, %s563_s4, %s564_s9  }
 0x131 PF: > { %p400_p9 = scmp.ge.s32.totalorder %s561_s19, 2  ;;  %s298_s10 = sand.u32 1, %s533_s12  }
 0x132   : > { %s299_s11 = scalar_lea.sflag [#allocation3], %s298_s10 }
 0x133   : > { %p397_p10 = pnand %p400_p9, %p645_p8 }
 0x135   : > { %p398_p11 = pneg %p397_p10 }
 0x137   : > { %528 = dma.done.wait (%p398_p11), %s299_s11, 512  }
 0x138   : > { %530 = vsyncadd (%p398_p11), %s299_s11, 4294966784  ;;  %s16_s19 = sadd.s32 1, %s561_s19   ;;  %s728_s12 = smov %s537_s13 }
 0x139   : > { %p13_p12 = scmp.ge.s32.totalorder %s16_s19, 18   ;;  %s729_s13 = smov %s541_s14 }
 0x13a   : > { %s730_s14 = smov %s654_s30  ;;  %s731_s15 = smov %s553_s17 }
 0x13b   : > { %s732_s16 = smov %s557_s18  ;;  %s733_s17 = smov %s736_s22 }
 0x13c   : > { %s734_s18 = smov %s740_s23  ;;  %15 = sbr.rel (!%p13_p12) target bundleno = 5 (0x5), region = 67 }
 0x141   :  { %305 = vsyncpa [#allocation3], 1 }
 0x142   :  { %307 = vsyncpa [#allocation3 + $0x1], 1 }

// kernel: drn_seg_forward.2
= control target key start
LH: loop header
LB: loop body
LE: loop exit
PB: predicated region body
PF: predicated region fallthrough
CT: control target
= control target key end

     0   :  { %s936_s15 = smov 0   ;;  %s938_s16 = smov 0   ;;  %s1099_s0 = inlined_call_operand.vmem [shape: bf16[2,256,16], index: 0, kind: input, shape index: {}]   ;;  %s1100_s1 = inlined_call_operand.vmem [shape: bf16[128,256], index: 1, kind: input, shape index: {}]   ;;  %s1101_s2 = inlined_call_operand.vmem [shape: bf16[8,128], index: 2, kind: input, shape index: {}]   ;;  %s1102_s3 = inlined_call_operand.vmem [shape: f32[8,1], index: 3, kind: input, shape index: {}]   ;;  %s1103_s4 = inlined_call_operand.vmem [shape: bf16[2,8,16], index: 4, kind: output, shape index: {}]  }
   0x1   :  { %s940_s17 = smov 0  }
   0x2 LB: > { %s26_s18 = sadd.s32 1, %s904_s16  ;;  %p677_p0 = scmp.ge.s32.totalorder %s908_s17, 1  ;;  %s908_s17 = sphi %s940_s17, %s14_s17   ;;  %s904_s16 = sphi %s938_s16, %s1105_s16   ;;  %s900_s15 = sphi %s936_s15, %s1104_s15  }
   0x3   : > { %p28_p1 = scmp.ge.s32.totalorder %s26_s18, 2  ;;  %p181_p2 = scmp.lt.s32.totalorder %s908_s17, 3 }
   0x5   : > { %s1107_s18 = smov (%p28_p1, %s26_s18), 0  ;;  %p182_p3 = pnand %p677_p0, %p181_p2 }
   0x6   : > { %p212_p4 = scmp.lt.s32.totalorder (!%p182_p3), %s900_s15, 1 }
   0x7   : > { %185 = sbr.rel (%p182_p3) target bundleno = 411 (0x19b), region = 36 }
   0xc   : > { %s1109_s15 = smov (!%p212_p4, %s900_s15), 1  ;;  %v683_v14 = vld [vmem:[%s1100_s1] sm:$0xf]  ;;  %v813_v16 = vld [vmem:[%s1100_s1 + $0x4] sm:$0xf0]  ;;  %vm594_vm0 = vcmask 125952  }
   0xd   : > { %s811_s19 = sshll.u32 %s1109_s15, 7  ;;  %v723_v17 = vld [vmem:[%s1100_s1 + $0x50] sm:$0xf]  ;;  %v823_v19 = vld [vmem:[%s1100_s1 + $0x54] sm:$0xf0]  ;;  %v684_v24 = vor.u32 %v813_v16, %v683_v14  ;;  %s680_s25 = sshll.u32 %s1109_s15, 2 }
   0xe   : > { %s960_s22 = scalar_lea.vmem %s1099_s0, %s811_s19  ;;  %v812_v20 = vld [vmem:[%s1100_s1 + $0x4] sm:$0xf]  ;;  %v685_v21 = vld [vmem:[%s1100_s1 + $0x8] sm:$0xf0]  ;;  %v822_v22 = vld [vmem:[%s1100_s1 + $0x54] sm:$0xf]  ;;  %v724_v25 = vor.u32 %v823_v19, %v723_v17  ;;  %s226_s28 = scalar_lea.vmem %s1103_s4, %s680_s25 }
   0xf   : > { %v835_v0 = vld [vmem:[%s960_s22 + $0x38] sm:$0xff]  ;;  %v834_v2 = vld [vmem:[%s960_s22 + $0x30] sm:$0xff]  ;;  %v833_v4 = vld [vmem:[%s960_s22 + $0x28] sm:$0xff]  ;;  %v688_v26 = vor.u32 %v812_v20, %v685_v21 }
  0x10   : > { %v843_v1 = vld [vmem:[%s960_s22 + $0x78] sm:$0xff]  ;;  %451 = vmatpush.bf16.msra.mxu0 %v835_v0  ;;  %844 = vmatpush.bf16.msra.mxu3 %v835_v0  ;;  %v842_v3 = vld [vmem:[%s960_s22 + $0x70] sm:$0xff]  ;;  %v841_v5 = vld [vmem:[%s960_s22 + $0x68] sm:$0xff] }
  0x11   : > { %500 = vmatpush.bf16.msra.mxu1 %v843_v1  ;;  %852 = vmatpush.bf16.msra.mxu2 %v843_v1  ;;  %v832_v6 = vld [vmem:[%s960_s22 + $0x20] sm:$0xff]  ;;  %v831_v8 = vld [vmem:[%s960_s22 + $0x18] sm:$0xff]  ;;  %v830_v10 = vld [vmem:[%s960_s22 + $0x10] sm:$0xff] }
  0x12   : > { %v840_v7 = vld [vmem:[%s960_s22 + $0x60] sm:$0xff]  ;;  %v839_v9 = vld [vmem:[%s960_s22 + $0x58] sm:$0xff]  ;;  %v838_v11 = vld [vmem:[%s960_s22 + $0x50] sm:$0xff] }
  0x13   : > { %v829_v12 = vld [vmem:[%s960_s22 + $0x8] sm:$0xff]  ;;  %v828_v15 = vld [vmem:[%s960_s22] sm:$0xff]  ;;  %v725_v23 = vld [vmem:[%s1100_s1 + $0x58] sm:$0xf0] }
  0x14   : > { %452 = vmatpush.bf16.msra.mxu0 %v834_v2  ;;  %845 = vmatpush.bf16.msra.mxu3 %v834_v2  ;;  %v837_v13 = vld [vmem:[%s960_s22 + $0x48] sm:$0xff]  ;;  %v836_v18 = vld [vmem:[%s960_s22 + $0x40] sm:$0xff]  ;;  %v728_v27 = vor.u32 %v822_v22, %v725_v23  ;;  %v691_v28 = vld [vmem:[%s1100_s1 + $0x10] sm:$0xf] }
  0x15   : > { %501 = vmatpush.bf16.msra.mxu1 %v842_v3  ;;  %853 = vmatpush.bf16.msra.mxu2 %v842_v3  ;;  %v815_v29 = vld [vmem:[%s1100_s1 + $0x14] sm:$0xf0]  ;;  %v731_v30 = vld [vmem:[%s1100_s1 + $0x60] sm:$0xf]  ;;  %v825_v31 = vld [vmem:[%s1100_s1 + $0x64] sm:$0xf0] }
  0x16   : > { %v814_v32 = vld [vmem:[%s1100_s1 + $0x14] sm:$0xf]  ;;  %v693_v33 = vld [vmem:[%s1100_s1 + $0x18] sm:$0xf0]  ;;  %v824_v34 = vld [vmem:[%s1100_s1 + $0x64] sm:$0xf]  ;;  %v692_v36 = vor.u32 %v815_v29, %v691_v28  ;;  %v732_v37 = vor.u32 %v825_v31, %v731_v30 }
  0x17   : > { %v733_v35 = vld [vmem:[%s1100_s1 + $0x68] sm:$0xf0]  ;;  %v696_v38 = vor.u32 %v814_v32, %v693_v33  ;;  %v699_v40 = vld [vmem:[%s1100_s1 + $0x20] sm:$0xf]  ;;  %v817_v41 = vld [vmem:[%s1100_s1 + $0x24] sm:$0xf0] }
  0x18   : > { %453 = vmatpush.bf16.msra.mxu0 %v833_v4  ;;  %846 = vmatpush.bf16.msra.mxu3 %v833_v4  ;;  %v736_v39 = vor.u32 %v824_v34, %v733_v35  ;;  %v739_v42 = vld [vmem:[%s1100_s1 + $0x70] sm:$0xf]  ;;  %v827_v43 = vld [vmem:[%s1100_s1 + $0x74] sm:$0xf0]  ;;  %v816_v44 = vld [vmem:[%s1100_s1 + $0x24] sm:$0xf]  ;;  %v700_v48 = vor.u32 %v817_v41, %v699_v40 }
  0x19   : > { %502 = vmatpush.bf16.msra.mxu1 %v841_v5  ;;  %854 = vmatpush.bf16.msra.mxu2 %v841_v5  ;;  %v701_v45 = vld [vmem:[%s1100_s1 + $0x28] sm:$0xf0]  ;;  %v826_v46 = vld [vmem:[%s1100_s1 + $0x74] sm:$0xf]  ;;  %v741_v47 = vld [vmem:[%s1100_s1 + $0x78] sm:$0xf0]  ;;  %v740_v49 = vor.u32 %v827_v43, %v739_v42 }
  0x1a   : > { %v704_v50 = vor.u32 %v816_v44, %v701_v45  ;;  %v744_v51 = vor.u32 %v826_v46, %v741_v47  ;;  %v707_v52 = vld [vmem:[%s1100_s1 + $0x30] sm:$0xf]  ;;  %v819_v53 = vld [vmem:[%s1100_s1 + $0x34] sm:$0xf0]  ;;  %v818_v54 = vld [vmem:[%s1100_s1 + $0x34] sm:$0xf] }
  0x1b   : > { %v709_v55 = vld [vmem:[%s1100_s1 + $0x38] sm:$0xf0]  ;;  %v708_v56 = vor.u32 %v819_v53, %v707_v52  ;;  %v715_v58 = vld [vmem:[%s1100_s1 + $0x40] sm:$0xf]  ;;  %v821_v59 = vld [vmem:[%s1100_s1 + $0x44] sm:$0xf0] }
  0x1c   : > { %454 = vmatpush.bf16.msra.mxu0 %v832_v6  ;;  %847 = vmatpush.bf16.msra.mxu3 %v832_v6  ;;  %v712_v57 = vor.u32 %v818_v54, %v709_v55  ;;  %v820_v60 = vld [vmem:[%s1100_s1 + $0x44] sm:$0xf]  ;;  %v717_v61 = vld [vmem:[%s1100_s1 + $0x48] sm:$0xf0]  ;;  %v716_v62 = vor.u32 %v821_v59, %v715_v58  ;;  %v910_v52 = vmov 0  }
  0x1d   : > { %503 = vmatpush.bf16.msra.mxu1 %v840_v7  ;;  %855 = vmatpush.bf16.msra.mxu2 %v840_v7  ;;  %v720_v63 = vor.u32 %v820_v60, %v717_v61 }
  0x1e   : > { %885 = vset.pattern.permute.xlu0 %v910_v52 }
  0x20   : > { %455 = vmatpush.bf16.msra.mxu0 %v831_v8  ;;  %848 = vmatpush.bf16.msra.mxu3 %v831_v8 }
  0x21   : > { %504 = vmatpush.bf16.msra.mxu1 %v839_v9  ;;  %856 = vmatpush.bf16.msra.mxu2 %v839_v9 }
  0x24   : > { %456 = vmatpush.bf16.msra.mxu0 %v830_v10  ;;  %849 = vmatpush.bf16.msra.mxu3 %v830_v10 }
  0x25   : > { %505 = vmatpush.bf16.msra.mxu1 %v838_v11  ;;  %857 = vmatpush.bf16.msra.mxu2 %v838_v11 }
  0x28   : > { %457 = vmatpush.bf16.msra.mxu0 %v829_v12  ;;  %850 = vmatpush.bf16.msra.mxu3 %v829_v12 }
  0x29   : > { %506 = vmatpush.bf16.msra.mxu1 %v837_v13  ;;  %858 = vmatpush.bf16.msra.mxu2 %v837_v13 }
  0x2c   : > { %458 = vmatpush.bf16.msra.mxu0 %v828_v15  ;;  %851 = vmatpush.bf16.msra.mxu3 %v828_v15 }
  0x2d   : > { %507 = vmatpush.bf16.msra.mxu1 %v836_v18  ;;  %859 = vmatpush.bf16.msra.mxu2 %v836_v18 }
  0x2f   : > { %459 = vmatmul.bf16.vlgmr.msra.gmra.mxu0 %v684_v24  ;;  %484 = vmatmul.bf16.vlgmr.msra.gmra.mxu3 %v724_v25 }
  0x30   : > { %508 = vmatmul.bf16.vlgmr.msra.gmra.mxu1 %v688_v26  ;;  %533 = vmatmul.bf16.vlgmr.msra.gmra.mxu2 %v728_v27 }
  0x3f   : > { %464 = vmatmul.bf16.gmra.mxu0 %v692_v36  ;;  %489 = vmatmul.bf16.gmra.mxu3 %v732_v37 }
  0x40   : > { %513 = vmatmul.bf16.gmra.mxu1 %v696_v38  ;;  %538 = vmatmul.bf16.gmra.mxu2 %v736_v39 }
  0x4f   : > { %469 = vmatmul.bf16.gmra.mxu0 %v700_v48  ;;  %494 = vmatmul.bf16.gmra.mxu3 %v740_v49 }
  0x50   : > { %518 = vmatmul.bf16.gmra.mxu1 %v704_v50  ;;  %543 = vmatmul.bf16.gmra.mxu2 %v744_v51  ;;  %v574_v51 = vld [vmem:[%s1102_s3] sm:$0xff] }
  0x51   : > { %577 = vperm.xlu0 %885, %v574_v51  }
  0x5f   : > { %474 = vmatmul.bf16.gmra.mxu0 %v708_v56 }
  0x60   : > { %523 = vmatmul.bf16.gmra.mxu1 %v712_v57 }
  0x6f   : > { %479 = vmatmul.bf16.gmra.mxu0 %v716_v62 }
  0x70   : > { %528 = vmatmul.bf16.gmra.mxu1 %v720_v63 }
  0xac   : > { %v460_v0 = vpop.f32.mrf.mxu0 }
  0xad   : > { %v509_v1 = vpop.f32.mrf.mxu1 }
  0xae   : > { %v510_v2 = vadd.f32 %v509_v1, %v460_v0 }
  0xb0   : > { %v549_v8 = vmax.f32 %v510_v2, 0.0 }
  0xb2   : > { %v485_v3 = vpop.f32.mrf.mxu3 }
  0xb3   : > { %v534_v4 = vpop.f32.mrf.mxu2 }
  0xb4   : > { %v462_v5 = vpop.f32.mrf.mxu0  ;;  %v535_v38 = vadd.f32 %v534_v4, %v485_v3 }
  0xb5   : > { %v511_v6 = vpop.f32.mrf.mxu1 }
  0xb6   : > { %v512_v7 = vadd.f32 %v511_v6, %v462_v5  ;;  %v559_v43 = vmax.f32 %v535_v38, 0.0 }
  0xb8   : > { %v550_v9 = vmax.f32 %v512_v7, 0.0 }
  0xba   : > { %v487_v10 = vpop.f32.mrf.mxu3  ;;  %v1074_v11 = vpack.c.bf16 %v550_v9, %v549_v8 }
  0xbb   : > { %v536_v12 = vpop.f32.mrf.mxu2 }
  0xbc   : > { %v465_v13 = vpop.f32.mrf.mxu0  ;;  %v537_v39 = vadd.f32 %v536_v12, %v487_v10  ;;  %v573_v10 = vld [vmem:[%s1101_s2] sm:$0xf] }
  0xbd   : > { %v514_v14 = vpop.f32.mrf.mxu1 }
  0xbe   : > { %v1076_v15 = vadd.f32 %v514_v14, %v465_v13  ;;  %v560_v44 = vmax.f32 %v537_v39, 0.0 }
  0xc0   : > { %v570_v48 = vpack.c.bf16 %v560_v44, %v559_v43  ;;  %v551_v8 = vmax.f32 %v1076_v15, 0.0 }
  0xc2   : > { %v490_v16 = vpop.f32.mrf.mxu3 }
  0xc3   : > { %v539_v17 = vpop.f32.mrf.mxu2  ;;  %v578_v12 = vpop.permute.xlu0 %577 }
  0xc4   : > { %v467_v18 = vpop.f32.mrf.mxu0  ;;  %v540_v31 = vadd.f32 %v539_v17, %v490_v16 }
  0xc5   : > { %v516_v19 = vpop.f32.mrf.mxu1 }
  0xc6   : > { %v561_v40 = vmax.f32 %v540_v31, 0.0  ;;  %v517_v2 = vadd.f32 %v516_v19, %v467_v18 }
  0xc8   : > { %v552_v6 = vmax.f32 %v517_v2, 0.0 }
  0xca   : > { %v492_v20 = vpop.f32.mrf.mxu3  ;;  %v566_v9 = vpack.c.bf16 %v552_v6, %v551_v8 }
  0xcb   : > { %v541_v21 = vpop.f32.mrf.mxu2 }
  0xcc   : > { %v470_v22 = vpop.f32.mrf.mxu0  ;;  %v542_v32 = vadd.f32 %v541_v21, %v492_v20 }
  0xcd   : > { %v519_v23 = vpop.f32.mrf.mxu1 }
  0xce   : > { %v562_v41 = vmax.f32 %v542_v32, 0.0  ;;  %v520_v0 = vadd.f32 %v519_v23, %v470_v22 }
  0xd0   : > { %v571_v46 = vpack.c.bf16 %v562_v41, %v561_v40  ;;  %v553_v5 = vmax.f32 %v520_v0, 0.0 }
  0xd2   : > { %v495_v24 = vpop.f32.mrf.mxu3 }
  0xd3   : > { %v544_v25 = vpop.f32.mrf.mxu2 }
  0xd4   : > { %v472_v26 = vpop.f32.mrf.mxu0  ;;  %v545_v28 = vadd.f32 %v544_v25, %v495_v24 }
  0xd5   : > { %v521_v27 = vpop.f32.mrf.mxu1 }
  0xd6   : > { %v563_v33 = vmax.f32 %v545_v28, 0.0  ;;  %v522_v61 = vadd.f32 %v521_v27, %v472_v26 }
  0xd8   : > { %v554_v3 = vmax.f32 %v522_v61, 0.0 }
  0xda   : > { %v497_v29 = vpop.f32.mrf.mxu3  ;;  %v567_v7 = vpack.c.bf16 %v554_v3, %v553_v5 }
  0xdb   : > { %v546_v30 = vpop.f32.mrf.mxu2 }
  0xdc   : > { %v547_v34 = vadd.f32 %v546_v30, %v497_v29  ;;  %v475_v35 = vpop.f32.mrf.mxu0 }
  0xdd   : > { %v524_v36 = vpop.f32.mrf.mxu1 }
  0xde   : > { %v564_v37 = vmax.f32 %v547_v34, 0.0  ;;  %v525_v58 = vadd.f32 %v524_v36, %v475_v35 }
  0xe0   : > { %v572_v42 = vpack.c.bf16 %v564_v37, %v563_v33  ;;  %v555_v1 = vmax.f32 %v525_v58, 0.0 }
  0xe2   : > { %580 = vmatpush.bf16.msrb.mxu2 %v572_v42 }
  0xe4   : > { %v477_v45 = vpop.f32.mrf.mxu0 }
  0xe5   : > { %v526_v47 = vpop.f32.mrf.mxu1 }
  0xe6   : > { %581 = vmatpush.bf16.msrb.mxu2 %v571_v46  ;;  %v527_v56 = vadd.f32 %v526_v47, %v477_v45 }
  0xe8   : > { %v556_v62 = vmax.f32 %v527_v56, 0.0 }
  0xea   : > { %582 = vmatpush.bf16.msrb.mxu2 %v570_v48  ;;  %v568_v4 = vpack.c.bf16 %v556_v62, %v555_v1 }
  0xec   : > { %v480_v49 = vpop.f32.mrf.mxu0 }
  0xed   : > { %v529_v50 = vpop.f32.mrf.mxu1 }
  0xee   : > { %v530_v53 = vadd.f32 %v529_v50, %v480_v49 }
  0xf0   : > { %v557_v59 = vmax.f32 %v530_v53, 0.0 }
  0xf4   : > { %v482_v54 = vpop.f32.mrf.mxu0 }
  0xf5   : > { %v531_v55 = vpop.f32.mrf.mxu1 }
  0xf6   : > { %v532_v57 = vadd.f32 %v531_v55, %v482_v54 }
  0xf8   : > { %v558_v60 = vmax.f32 %v532_v57, 0.0 }
  0xfa   : > { %v569_v63 = vpack.c.bf16 %v558_v60, %v557_v59 }
  0xfc   : > { %583 = vmatpush.bf16.msrb.mxu2 %v569_v63 }
 0x100   : > { %584 = vmatpush.bf16.msrb.mxu2 %v568_v4 }
 0x104   : > { %585 = vmatpush.bf16.msrb.mxu2 %v567_v7 }
 0x108   : > { %586 = vmatpush.bf16.msrb.mxu2 %v566_v9 }
 0x10c   : > { %587 = vmatpush.bf16.msrb.mxu2 %v1074_v11 }
 0x10f   : > { %588 = vmatmul.bf16.vlgmr.msrb.gmra.mxu2 %v573_v10 }
 0x192   : > { %v589_v13 = vpop.f32.mrf.mxu2 }
 0x193   : > { %v590_v14 = vadd.f32 %v589_v13, %v578_v12 }
 0x195   : > { %v593_v15 = vpack.c.bf16 %v590_v14, %v590_v14 }
 0x197   : > { %595 = vst.msk [vmem:[%s226_s28] sm:$0xf] %vm594_vm0, %v593_v15 }
 0x19a   : > { %v591_v16 = vpop.f32.mrf.mxu2 }
 0x19b PF: > { %s14_s17 = sadd.s32 1, %s908_s17   ;;  %s1104_s15 = smov %s904_s16 }
 0x19c   : > { %p11_p5 = scmp.ge.s32.totalorder %s14_s17, 4   ;;  %s1105_s16 = smov %s1107_s18 }
 0x19e   :  { %13 = sbr.rel (!%p11_p5) target bundleno = 2 (0x2), region = 66 }

</bundles_post_ra>
